<compile_context>
chip_gen: v6e
topology: v6e:2x2x1
jax: 0.10.0
libtpu: 0.0.40
codegen_flags: <defaults>
</compile_context>

<pallas_src>
from functools import partial

import jax
import jax.numpy as jnp
from jax.experimental import pallas as pl
from jax.experimental.pallas import tpu as pltpu


# ----------------------------------------------------------------------------
# Fused kernel: attention energy + relu + softmax + context  ->  LSTM cell step.
# PyTorch LSTM gate order: i, f, g, o.  rnn_input feature order: [context, emb1, emb2]
# (embedding halves are pre-projected into the gate offset outside the kernel).
# ----------------------------------------------------------------------------
def _att_decoder_step_kernel(hid_ref, cell_ref, enc_ref, goff_ref,
                             wh_row_ref, we_row_ref, w_gate_ref, be_ref,
                             hc_out_ref):
    hid = hid_ref[...]                                        # (B, H)  f32 state
    enc = enc_ref[...]                                        # (B, S, H) mxu dtype
    B, S, H = enc.shape
    mx = enc.dtype                                            # MXU operand dtype

    # ---- attention energy: relu(<hid, wh> + <enc, we> + b_e) --------------------
    # hid·wh is tiny -> VPU multiply + XLU lane-reduce (keeps the MXU/MRF for enc work).
    h_dot = jnp.sum(hid * wh_row_ref[...], axis=-1, keepdims=True)          # (B, 1) f32
    # enc·we as a batched q=1 MXU matmul (no (B,S,H) broadcast temp).
    we_b = jnp.broadcast_to(we_row_ref[...][None, :, :], (B, 1, H))          # (B, 1, H)
    e = jnp.einsum("bqh,bsh->bqs", we_b, enc,
                   preferred_element_type=jnp.float32).reshape(B, S)         # (B, S) f32
    e = jnp.maximum(e + h_dot + be_ref[0], 0.0)

    # ---- softmax over S in f32 (matches nn.Softmax(dim=1) on (B, S, 1)) ---------
    p = jnp.exp(e - jnp.max(e, axis=-1, keepdims=True))                      # (B, S)
    inv_den = pl.reciprocal(jnp.sum(p, axis=-1, keepdims=True), approx=True)  # (B, 1) EUP

    # ---- context = softmax(e) @ enc on the MXU; fold 1/sum into the f32 result --
    ctx = jnp.einsum("bqs,bsh->bqh", p[:, None, :].astype(mx), enc,
                     preferred_element_type=jnp.float32).reshape(B, H) * inv_den  # (B, H) f32

    # ---- LSTM gates: ONE merged MXU matmul of [ctx, hid] + precomputed offset ---
    x = jnp.concatenate([ctx, hid], axis=-1).astype(mx)                      # (B, 2H)
    gates = (jnp.dot(x, w_gate_ref[...], preferred_element_type=jnp.float32)
             + goff_ref[...])                                                # (B, 4H) f32

    # TODO(synk): if H stays < 128 at deployment, pad gates so each gate starts on a
    # 128-lane boundary (or mask full-width sigmoid/tanh) to avoid 32-lane slices.
    i = jax.nn.sigmoid(gates[:, 0 * H:1 * H])
    f = jax.nn.sigmoid(gates[:, 1 * H:2 * H])
    g = jnp.tanh(gates[:, 2 * H:3 * H])
    o = jax.nn.sigmoid(gates[:, 3 * H:4 * H])
    c_new = f * cell_ref[...] + i * g
    h_new = o * jnp.tanh(c_new)
    # Lane-dense packed output slab: [h_new | c_new], split by the wrapper.
    hc_out_ref[...] = jnp.concatenate([h_new, c_new], axis=-1)               # (B, 2H)


def _fused_att_lstm_call(hid_bh, cell_bh, enc, gate_off, wh_row, we_row, w_gate, b_energy):
    B, S, H = enc.shape
    vmem = pltpu.MemorySpace.VMEM
    # TODO(synk): at production shapes, tile S as an 'arbitrary' grid axis with an
    # online-softmax (m, l, acc) scratch sized for v7x's 64 MiB VMEM, and add a
    # 'parallel' batch-tile axis so both v7x TensorCores get work.
    return pl.pallas_call(
        _att_decoder_step_kernel,
        out_shape=jax.ShapeDtypeStruct((B, 2 * H), jnp.float32),
        in_specs=[
            pl.BlockSpec(memory_space=vmem),                        # hidden (B, H)
            pl.BlockSpec(memory_space=vmem),                        # cell   (B, H)
            pl.BlockSpec(memory_space=vmem),                        # enc_out (B, S, H)
            pl.BlockSpec(memory_space=vmem),                        # gate offset (B, 4H)
            pl.BlockSpec(memory_space=vmem),                        # wh row (1, H) f32
            pl.BlockSpec(memory_space=vmem),                        # we row (1, H)
            pl.BlockSpec(memory_space=vmem),                        # merged gate W (2H, 4H)
            pl.BlockSpec(memory_space=pltpu.MemorySpace.SMEM),      # energy bias (1,)
        ],
        out_specs=pl.BlockSpec(memory_space=vmem),
        compiler_params=pltpu.CompilerParams(vmem_limit_bytes=32 * 1024 * 1024),
    )(hid_bh, cell_bh, enc, gate_off, wh_row, we_row, w_gate, b_energy)


# ----------------------------------------------------------------------------
# One-time weight re-layout (hoisted out of the per-step path).
# ----------------------------------------------------------------------------
def prepare_kernel_params(params):
    H = params["w_hh"].shape[1]
    E = params["emb1"].shape[1]
    w_ih = params["w_ih"]                                     # (4H, H + 2E): [ctx, e1, e2]
    assert w_ih.shape[1] == H + 2 * E, "w_ih input order must be [context, emb1, emb2]"
    w_ctx = jnp.transpose(w_ih[:, :H])                        # (H, 4H)
    w_e1 = jnp.transpose(w_ih[:, H:H + E])                    # (E, 4H)
    w_e2 = jnp.transpose(w_ih[:, H + E:])                     # (E, 4H)
    b = (params["b_ih"] + params["b_hh"])[None, :]            # (1, 4H)
    return {
        "wh_row": params["w_energy"][:, :H],                  # (1, H) energy, hidden half
        "we_row": params["w_energy"][:, H:],                  # (1, H) energy, enc half
        "b_energy": params["b_energy"].reshape(1).astype(jnp.float32),      # (1,) SMEM
        # merged [ctx; hid] gate weight -> single MXU matmul per step
        "w_gate": jnp.concatenate([w_ctx, jnp.transpose(params["w_hh"])], axis=0),  # (2H, 4H)
        # embedding projection tables: gather replaces 2 per-step matmuls; bias folded once
        "emb1_proj": params["emb1"] @ w_e1 + b,               # (V1, 4H)
        "emb2_proj": params["emb2"] @ w_e2,                   # (V2, 4H)
    }


# ----------------------------------------------------------------------------
# Full forward (glue in plain JAX: projection-table gather + pack/pad bookkeeping).
# ----------------------------------------------------------------------------
@partial(jax.jit, static_argnames=("mxu_dtype",))
def att_decoder_forward(kparams, input1, input2, input_length, enc_out, hidden, cell,
                        mxu_dtype=jnp.bfloat16):
    H = hidden.shape[-1]
    # TODO(synk): the projection-row gather stays in XLA (jnp.take); padding_idx=0 rows of
    # the embeddings are zero, so only the folded bias contributes for pad tokens (exact).
    gate_off = (jnp.take(kparams["emb1_proj"], input1[:, 0], axis=0)
                + jnp.take(kparams["emb2_proj"], input2[:, 0], axis=0))     # (B, 4H) f32

    # MXU operands in mxu_dtype (bf16 default: halves the dominant enc HBM->VMEM stream);
    # all softmax / gate / cell math stays f32 inside the kernel.
    enc = enc_out.astype(mxu_dtype)
    w_gate = kparams["w_gate"].astype(mxu_dtype)
    we_row = kparams["we_row"].astype(mxu_dtype)

    hc = _fused_att_lstm_call(hidden[0], cell[0], enc, gate_off,
                              kparams["wh_row"], we_row, w_gate, kparams["b_energy"])
    h_new, c_new = hc[:, :H], hc[:, H:]

    dec_lstm_out = h_new[:, None, :]                          # (B, 1, H) padded output
    # TODO(synk): pack_padded/pad_packed_sequence are bookkeeping-only (step length 1);
    # lengths are passed through unchanged.
    # TODO(synk): for T autoregressive steps, make T the Pallas grid axis ('arbitrary') with
    # weight BlockSpecs using constant index_maps (weights stay VMEM-resident), h/c carried
    # in VMEM scratch, input_output_aliases for the final state, and ids via scalar prefetch.
    return dec_lstm_out, (h_new[None], c_new[None]), input_length


# ----------------------------------------------------------------------------
# Pure-JAX reference (for correctness check) — uses the raw PyTorch-layout params.
# ----------------------------------------------------------------------------
def _reference_forward(params, input1, input2, input_length, enc_out, hidden, cell):
    B, S, H = enc_out.shape
    embeds1 = jnp.take(params["emb1"], input1, axis=0)
    embeds2 = jnp.take(params["emb2"], input2, axis=0)
    hid_rep = jnp.repeat(jnp.transpose(hidden, (1, 0, 2)), S, axis=1)   # (B, S, H)
    cat = jnp.concatenate([hid_rep, enc_out], axis=-1)                  # (B, S, 2H)
    energy = jnp.maximum(cat @ params["w_energy"][0] + params["b_energy"][0], 0.0)
    attn = jax.nn.softmax(energy, axis=1)                               # (B, S)
    context = jnp.einsum("bs,bsh->bh", attn, enc_out)
    x = jnp.concatenate([context, embeds1[:, 0], embeds2[:, 0]], axis=-1)
    gates = x @ params["w_ih"].T + hidden[0] @ params["w_hh"].T + params["b_ih"] + params["b_hh"]
    i, f, g, o = jnp.split(gates, 4, axis=-1)
    c_new = jax.nn.sigmoid(f) * cell[0] + jax.nn.sigmoid(i) * jnp.tanh(g)
    h_new = jax.nn.sigmoid(o) * jnp.tanh(c_new)
    return h_new[:, None, :], (h_new[None], c_new[None]), input_length


# ----------------------------------------------------------------------------
def init_params(key, output_dim1, output_dim2, embedding_dim, hidden_dim):
    E, H = embedding_dim, hidden_dim
    ks = jax.random.split(key, 8)
    scale = 1.0 / jnp.sqrt(H)
    emb1 = jax.random.normal(ks[0], (output_dim1, E), jnp.float32) * 0.1
    emb2 = jax.random.normal(ks[1], (output_dim2, E), jnp.float32) * 0.1
    emb1 = emb1.at[0].set(0.0)   # padding_idx=0
    emb2 = emb2.at[0].set(0.0)
    return {
        "emb1": emb1,
        "emb2": emb2,
        "w_energy": jax.random.uniform(ks[2], (1, 2 * H), jnp.float32, -scale, scale),
        "b_energy": jax.random.uniform(ks[3], (1,), jnp.float32, -scale, scale),
        "w_ih": jax.random.uniform(ks[4], (4 * H, 2 * E + H), jnp.float32, -scale, scale),
        "w_hh": jax.random.uniform(ks[5], (4 * H, H), jnp.float32, -scale, scale),
        "b_ih": jax.random.uniform(ks[6], (4 * H,), jnp.float32, -scale, scale),
        "b_hh": jax.random.uniform(ks[7], (4 * H,), jnp.float32, -scale, scale),
    }


if __name__ == "__main__":
    B, S, H, E = 2, 8, 32, 16
    output_dim1, output_dim2, n_layers = 11, 13, 1

    key = jax.random.PRNGKey(0)
    kparams_key, k1, k2, k3, k4, k5 = jax.random.split(key, 6)
    params = init_params(kparams_key, output_dim1, output_dim2, E, H)
    kparams = prepare_kernel_params(params)          # one-time layout / projection hoist

    input1 = jax.random.randint(k1, (B, 1), 0, output_dim1, dtype=jnp.int32)
    input2 = jax.random.randint(k2, (B, 1), 0, output_dim2, dtype=jnp.int32)
    input_length = jnp.ones((B,), dtype=jnp.int32)             # decoder step length = 1
    enc_out = jax.random.normal(k3, (B, S, H), jnp.float32)    # padded encoder LSTM output
    hidden = jax.random.normal(k4, (n_layers, B, H), jnp.float32)
    cell = jax.random.normal(k5, (n_layers, B, H), jnp.float32)

    ref_out, (rh0, rc0), _ = _reference_forward(
        params, input1, input2, input_length, enc_out, hidden, cell)

    # --- f32 MXU path: exact fused math, only the EUP approx reciprocal differs ---------
    dec32, (h32, c32), lengths = att_decoder_forward(
        kparams, input1, input2, input_length, enc_out, hidden, cell, mxu_dtype=jnp.float32)
    jax.block_until_ready((dec32, h32, c32, lengths))
    assert dec32.shape == (B, 1, H) and h32.shape == (1, B, H) and c32.shape == (1, B, H)
    assert jnp.allclose(dec32, ref_out, atol=2e-3, rtol=2e-3)
    assert jnp.allclose(h32, rh0, atol=2e-3, rtol=2e-3)
    assert jnp.allclose(c32, rc0, atol=2e-3, rtol=2e-3)

    # --- bf16 MXU path (production default per perf review): looser tolerance -----------
    dec_bf, (hbf, cbf), _ = att_decoder_forward(
        kparams, input1, input2, input_length, enc_out, hidden, cell, mxu_dtype=jnp.bfloat16)
    jax.block_until_ready((dec_bf, hbf, cbf))
    assert jnp.allclose(dec_bf, ref_out, atol=3e-2, rtol=3e-2)
    assert jnp.allclose(hbf, rh0, atol=3e-2, rtol=3e-2)
    assert jnp.allclose(cbf, rc0, atol=3e-2, rtol=3e-2)

    print("KERNEL_OK")
</pallas_src>

<mosaic_0001>
module attributes {stable_mosaic.version = 11 : i64} {
  func.func @_att_decoder_step_kernel(%arg0: memref<2x32xf32, #tpu.memory_space<vmem>>, %arg1: memref<2x32xf32, #tpu.memory_space<vmem>>, %arg2: memref<2x8x32xf32, #tpu.memory_space<vmem>>, %arg3: memref<2x128xf32, #tpu.memory_space<vmem>>, %arg4: memref<1x32xf32, #tpu.memory_space<vmem>>, %arg5: memref<1x32xf32, #tpu.memory_space<vmem>>, %arg6: memref<64x128xf32, #tpu.memory_space<vmem>>, %arg7: memref<1xf32, #tpu.memory_space<smem>>, %arg8: memref<2x64xf32, #tpu.memory_space<vmem>>) attributes {dimension_semantics = [], scalar_prefetch = 0 : i64, scratch_operands = 0 : i64, tpu.core_type = #tpu.core_type<tc>} {
    %c0 = arith.constant 0 : index
    %c0_0 = arith.constant 0 : index
    %0 = vector.load %arg0[%c0, %c0_0] : memref<2x32xf32, #tpu.memory_space<vmem>>, vector<2x32xf32>
    %c0_1 = arith.constant 0 : index
    %c0_2 = arith.constant 0 : index
    %c0_3 = arith.constant 0 : index
    %1 = vector.load %arg2[%c0_1, %c0_2, %c0_3] : memref<2x8x32xf32, #tpu.memory_space<vmem>>, vector<2x8x32xf32>
    %c0_4 = arith.constant 0 : index
    %c0_5 = arith.constant 0 : index
    %2 = vector.load %arg4[%c0_4, %c0_5] : memref<1x32xf32, #tpu.memory_space<vmem>>, vector<1x32xf32>
    %3 = vector.broadcast %2 : vector<1x32xf32> to vector<2x32xf32>
    %4 = arith.mulf %0, %3 : vector<2x32xf32>
    %cst = arith.constant dense<0.000000e+00> : vector<2xf32>
    %5 = vector.multi_reduction <add>, %4, %cst [1] : vector<2x32xf32> to vector<2xf32>
    %6 = vector.shape_cast %5 : vector<2xf32> to vector<2x1xf32>
    %c0_6 = arith.constant 0 : index
    %c0_7 = arith.constant 0 : index
    %7 = vector.load %arg5[%c0_6, %c0_7] : memref<1x32xf32, #tpu.memory_space<vmem>>, vector<1x32xf32>
    %8 = vector.shape_cast %7 : vector<1x32xf32> to vector<1x1x32xf32>
    %9 = vector.shape_cast %8 : vector<1x1x32xf32> to vector<1x1x32xf32>
    %10 = vector.broadcast %9 : vector<1x1x32xf32> to vector<2x1x32xf32>
    "tpu.trace_start"() <{level = 10 : i32, message = "bqh,bsh->bqs"}> : () -> ()
    %cst_8 = arith.constant dense<0.000000e+00> : vector<2x1x8xf32>
    %11 = tpu.matmul %10, %1, %cst_8 {dimension_numbers = #tpu.dot_dimension_numbers<[2], [2], [1], [1], [0, 0, 0, 1, 1, 1], [0], [0]>} : vector<2x1x32xf32>, vector<2x8x32xf32>, vector<2x1x8xf32> -> vector<2x1x8xf32>
    "tpu.trace_stop"() : () -> ()
    %12 = vector.shape_cast %11 : vector<2x1x8xf32> to vector<2x8xf32>
    %13 = vector.broadcast %6 : vector<2x1xf32> to vector<2x8xf32>
    %14 = arith.addf %12, %13 : vector<2x8xf32>
    %c0_9 = arith.constant 0 : index
    %15 = memref.load %arg7[%c0_9] : memref<1xf32, #tpu.memory_space<smem>>
    %16 = vector.broadcast %15 : f32 to vector<2x8xf32>
    %17 = arith.addf %14, %16 : vector<2x8xf32>
    %cst_10 = arith.constant 0.000000e+00 : f32
    %18 = vector.broadcast %cst_10 : f32 to vector<2x8xf32>
    %19 = arith.maximumf %17, %18 : vector<2x8xf32>
    %cst_11 = arith.constant dense<0xFF800000> : vector<2xf32>
    %20 = vector.multi_reduction <maximumf>, %19, %cst_11 [1] : vector<2x8xf32> to vector<2xf32>
    %21 = vector.shape_cast %20 : vector<2xf32> to vector<2x1xf32>
    %22 = vector.broadcast %21 : vector<2x1xf32> to vector<2x8xf32>
    %23 = arith.subf %19, %22 : vector<2x8xf32>
    %24 = math.exp %23 : vector<2x8xf32>
    %cst_12 = arith.constant dense<0.000000e+00> : vector<2xf32>
    %25 = vector.multi_reduction <add>, %24, %cst_12 [1] : vector<2x8xf32> to vector<2xf32>
    %26 = vector.shape_cast %25 : vector<2xf32> to vector<2x1xf32>
    %27 = tpu.reciprocal %26 {approx = true} : vector<2x1xf32> -> vector<2x1xf32>
    %28 = vector.shape_cast %24 : vector<2x8xf32> to vector<2x1x8xf32>
    "tpu.trace_start"() <{level = 10 : i32, message = "bqs,bsh->bqh"}> : () -> ()
    %cst_13 = arith.constant dense<0.000000e+00> : vector<2x1x32xf32>
    %29 = tpu.matmul %28, %1, %cst_13 {dimension_numbers = #tpu.dot_dimension_numbers<[2], [1], [1], [2], [0, 0, 0, 1, 1, 2], [0], [0]>} : vector<2x1x8xf32>, vector<2x8x32xf32>, vector<2x1x32xf32> -> vector<2x1x32xf32>
    "tpu.trace_stop"() : () -> ()
    %30 = vector.shape_cast %29 : vector<2x1x32xf32> to vector<2x32xf32>
    %31 = vector.broadcast %27 : vector<2x1xf32> to vector<2x32xf32>
    %32 = arith.mulf %30, %31 : vector<2x32xf32>
    %33 = tpu.concatenate %32, %0 in 1 : vector<2x32xf32>, vector<2x32xf32> -> vector<2x64xf32>
    %c0_14 = arith.constant 0 : index
    %c0_15 = arith.constant 0 : index
    %34 = vector.load %arg6[%c0_14, %c0_15] : memref<64x128xf32, #tpu.memory_space<vmem>>, vector<64x128xf32>
    %cst_16 = arith.constant dense<0.000000e+00> : vector<2x128xf32>
    %35 = tpu.matmul %33, %34, %cst_16 {dimension_numbers = #tpu.dot_dimension_numbers<[1], [0], [0], [1], [0, 0, 1, 1], [], []>} : vector<2x64xf32>, vector<64x128xf32>, vector<2x128xf32> -> vector<2x128xf32>
    %c0_17 = arith.constant 0 : index
    %c0_18 = arith.constant 0 : index
    %36 = vector.load %arg3[%c0_17, %c0_18] : memref<2x128xf32, #tpu.memory_space<vmem>>, vector<2x128xf32>
    %37 = arith.addf %35, %36 : vector<2x128xf32>
    %38 = vector.extract_strided_slice %37 {offsets = [0, 0], sizes = [2, 32], strides = [1, 1]} : vector<2x128xf32> to vector<2x32xf32>
    %39 = arith.negf %38 : vector<2x32xf32>
    %40 = math.exp %39 : vector<2x32xf32>
    %cst_19 = arith.constant 1.000000e+00 : f32
    %41 = vector.broadcast %cst_19 : f32 to vector<2x32xf32>
    %42 = arith.addf %41, %40 : vector<2x32xf32>
    %43 = arith.divf %41, %42 : vector<2x32xf32>
    %44 = vector.extract_strided_slice %37 {offsets = [0, 32], sizes = [2, 32], strides = [1, 1]} : vector<2x128xf32> to vector<2x32xf32>
    %45 = arith.negf %44 : vector<2x32xf32>
    %46 = math.exp %45 : vector<2x32xf32>
    %cst_20 = arith.constant 1.000000e+00 : f32
    %47 = vector.broadcast %cst_20 : f32 to vector<2x32xf32>
    %48 = arith.addf %47, %46 : vector<2x32xf32>
    %49 = arith.divf %47, %48 : vector<2x32xf32>
    %50 = vector.extract_strided_slice %37 {offsets = [0, 64], sizes = [2, 32], strides = [1, 1]} : vector<2x128xf32> to vector<2x32xf32>
    %51 = math.tanh %50 : vector<2x32xf32>
    %52 = vector.extract_strided_slice %37 {offsets = [0, 96], sizes = [2, 32], strides = [1, 1]} : vector<2x128xf32> to vector<2x32xf32>
    %53 = arith.negf %52 : vector<2x32xf32>
    %54 = math.exp %53 : vector<2x32xf32>
    %cst_21 = arith.constant 1.000000e+00 : f32
    %55 = vector.broadcast %cst_21 : f32 to vector<2x32xf32>
    %56 = arith.addf %55, %54 : vector<2x32xf32>
    %57 = arith.divf %55, %56 : vector<2x32xf32>
    %c0_22 = arith.constant 0 : index
    %c0_23 = arith.constant 0 : index
    %58 = vector.load %arg1[%c0_22, %c0_23] : memref<2x32xf32, #tpu.memory_space<vmem>>, vector<2x32xf32>
    %59 = arith.mulf %49, %58 : vector<2x32xf32>
    %60 = arith.mulf %43, %51 : vector<2x32xf32>
    %61 = arith.addf %59, %60 : vector<2x32xf32>
    %62 = math.tanh %61 : vector<2x32xf32>
    %63 = arith.mulf %57, %62 : vector<2x32xf32>
    %64 = tpu.concatenate %63, %61 in 1 : vector<2x32xf32>, vector<2x32xf32> -> vector<2x64xf32>
    %c0_24 = arith.constant 0 : index
    %c0_25 = arith.constant 0 : index
    %65 = vector.load %arg8[%c0_24, %c0_25] : memref<2x64xf32, #tpu.memory_space<vmem>>, vector<2x64xf32>
    tpu.vector_store %arg8[%c0_24, %c0_25], %64 {strides = array<i32>} : memref<2x64xf32, #tpu.memory_space<vmem>>, vector<2x64xf32>,
    return
  }
}

</mosaic_0001>

<bundles_post_ra>
// kernel: att_decoder_forward.1
= control target key start
LH: loop header
LB: loop body
LE: loop exit
PB: predicated region body
PF: predicated region fallthrough
CT: control target
= control target key end

     0   :  { %14 = vsyncpa [#allocation4], 0  ;;  %s848_s0 = inlined_call_operand.vmem [shape: f32[2,32], index: 0, kind: input, shape index: {}]   ;;  %s849_s1 = inlined_call_operand.hbm [shape: f32[2,32], index: 1, kind: input, shape index: {}]   ;;  %s850_s2 = inlined_call_operand.vmem [shape: f32[2,8,32], index: 2, kind: input, shape index: {}]   ;;  %s851_s3 = inlined_call_operand.vmem [shape: f32[2,128], index: 3, kind: input, shape index: {}]   ;;  %s852_s4 = inlined_call_operand.hbm [shape: f32[1,32], index: 4, kind: input, shape index: {}]   ;;  %s853_s5 = inlined_call_operand.hbm [shape: f32[1,32], index: 5, kind: input, shape index: {}]   ;;  %s854_s6 = inlined_call_operand.vmem [shape: f32[64,128], index: 6, kind: input, shape index: {}]   ;;  %s855_s7 = inlined_call_operand.<no memory space> [shape: f32[1], index: 7, kind: input, shape index: {}]   ;;  %s856_s8 = inlined_call_operand.vmem [shape: f32[2,64], index: 8, kind: output, shape index: {}]  }
   0x1   :  { %15 = vsyncpa [#allocation6], 0  ;;  %s708_s27 = smov [#allocation5]   ;;  %s709_s29 = smov [#allocation3]  }
   0x2   :  { %s38_s28 = sshll.u32 %s708_s27, 4  ;;  %s24_s30 = sshll.u32 %s709_s29, 4  ;;  %s39_s28 = int_to_ptr.vmem [resolvable:$true] %s38_s28  ;;  %s25_s30 = int_to_ptr.vmem [resolvable:$true] %s24_s30 }
   0x3   :  { %s652_s9 = scalar_lea.vmem %s39_s28, 16  ;;  %s656_s10 = scalar_lea.vmem %s39_s28, 32 }
   0x4   :  { %p653_p0 = scmp.ne.s32.totalorder %s39_s28, %s652_s9  ;;  %p657_p1 = scmp.lt.s32.totalorder %s39_s28, %s39_s28 }
   0x5   :  { %p658_p2 = scmp.lt.s32.totalorder %s656_s10, %s652_s9 }
   0x7   :  { %p659_p3 = por %p658_p2, %p657_p1 }
   0x9   :  { %p660_p4 = pnand %p659_p3, %p653_p0 }
   0xb   :  { %663 = shalt.err (!%p660_p4)
}
   0xc   :  { %41 = dma.hbm_to_vmem [thread:$0]  %s852_s4, 16, %s39_s28, [#allocation6]  }
   0xd   :  { %s672_s13 = scalar_lea.vmem %s25_s30, 32  ;;  %p677_p6 = scmp.lt.s32.totalorder %s25_s30, %s25_s30 }
   0xe   :  { %p673_p5 = scmp.ne.s32.totalorder %s25_s30, %s672_s13  ;;  %p678_p7 = scmp.lt.s32.totalorder %s672_s13, %s672_s13 }
  0x10   :  { %p679_p8 = por %p678_p7, %p677_p6 }
  0x12   :  { %p680_p9 = pnand %p679_p8, %p673_p5 }
  0x14   :  { %683 = shalt.err (!%p680_p9)
}
  0x15   :  { %27 = dma.hbm_to_vmem [thread:$0]  %s849_s1, 32, %s25_s30, [#allocation4]  }
  0x16   :  { %s710_s16 = smov [#allocation7]  }
  0x17   :  { %s48_s17 = sshll.u32 %s710_s16, 4  ;;  %s49_s17 = int_to_ptr.vmem [resolvable:$true] %s48_s17 }
  0x18   :  { %s692_s18 = scalar_lea.vmem %s49_s17, 16  ;;  %s696_s19 = scalar_lea.vmem %s49_s17, 32 }
  0x19   :  { %p693_p10 = scmp.ne.s32.totalorder %s49_s17, %s692_s18  ;;  %p697_p11 = scmp.lt.s32.totalorder %s49_s17, %s49_s17 }
  0x1a   :  { %p698_p12 = scmp.lt.s32.totalorder %s696_s19, %s692_s18 }
  0x1c   :  { %p699_p13 = por %p698_p12, %p697_p11 }
  0x1e   :  { %p700_p0 = pnand %p699_p13, %p693_p10 }
  0x20   :  { %703 = shalt.err (!%p700_p0)
}
  0x21   :  { %51 = dma.hbm_to_vmem [thread:$0]  %s853_s5, 16, %s49_s17, [#allocation6]  }
  0x22   :  { %704 = dma.done.wait [#allocation4], 32  }
  0x23   :  { %705 = vsyncadd [#allocation4], 4294967264 }
  0x24   :  { %706 = dma.done.wait [#allocation6], 32  }
  0x25   :  { %707 = vsyncadd [#allocation6], 4294967264  ;;  %v711_v0 = vmov 0.0   ;;  %vm712_vm0 = vmmov 0   ;;  %vm81_vm1 = vcmask 261120   ;;  %v66_v1 = vld [vmem:[%s850_s2] sm:$0xff]  ;;  %v238_v14 = vstv %s855_s7 }
  0x26   :  { %584 = vmatprep.subr.mxu1 %v711_v0  ;;  %586 = vmatprep.mubr.msk.f32.mxu1 %vm712_vm0, %v711_v0  ;;  %vm76_vm2 = vcmask 254976   ;;  %v80_v2 = vld [vmem:[#allocation7] sm:$0x1]  ;;  %v65_v3 = vld [vmem:[%s848_s0] sm:$0x3]  ;;  %v67_v5 = vld [vmem:[%s850_s2 + $0x8] sm:$0xff] }
  0x27   :  { %604 = vmatprep.subr.mxu0 %v711_v0  ;;  %620 = vmatprep.mubr.msk.f32.mxu0 %vm712_vm0, %v711_v0  ;;  %v558_v4 = vld [vmem:[#allocation5] ss:$0 sm:$0xff]  ;;  %vm246_vm3 = vcmask 1041409   ;;  %vm249_vm4 = vcmask 58368   ;;  %vm272_vm5 = vcmask 64512   ;;  %v440_v35 = vld [vmem:[%s854_s6 + $0x38] sm:$0xff] }
  0x28   :  { %585 = vmatpush3.xpose.msk.msra.mxu1 %vm81_vm1, %v66_v1  ;;  %v75_v6 = vmul.f32 %v558_v4, %v65_v3  ;;  %v439_v36 = vld [vmem:[%s854_s6 + $0x30] sm:$0xff]  ;;  %605 = vmatpush3.msra.mxu0 %v440_v35  ;;  %s713_s28 = smov 32   ;;  %v438_v37 = vld [vmem:[%s854_s6 + $0x28] sm:$0xff]  ;;  %v437_v38 = vld [vmem:[%s854_s6 + $0x20] sm:$0xff]  ;;  %vm442_vm6 = vcmask 523264   ;;  %s714_s4 = smov 64  }
  0x29   :  { %589 = vmatprep.subr.mxu1 %v711_v0  ;;  %606 = vmatprep.subr.mxu0 %v711_v0  ;;  %v436_v39 = vld [vmem:[%s854_s6 + $0x18] sm:$0xff]  ;;  %v435_v40 = vld [vmem:[%s854_s6 + $0x10] sm:$0xff]  ;;  %v434_v41 = vld [vmem:[%s854_s6 + $0x8] sm:$0xff]  ;;  %vm550_vm7 = vcmask 517120  }
  0x2a   :  { %v77_v7 = vsel %vm76_vm2, %v75_v6, 0.0  ;;  %607 = vmatpush3.msra.mxu0 %v439_v36  ;;  %v433_v42 = vld [vmem:[%s854_s6] sm:$0xff] }
  0x2b   :  { %587 = vmatmul.mubr.msk.f32.vlgmr.msra.gmra.mxu1 %vm81_vm1, %v80_v2  ;;  %78 = vadd.xlane.f32.xlu0 %v77_v7  ;;  %v523_v43 = vld [vmem:[#allocation3] sm:$0x3] }
  0x2c   :  { %590 = vmatpush3.xpose.msk.msra.mxu1 %vm81_vm1, %v67_v5  ;;  %591 = vmatprep.mubr.msk.f32.mxu1 %vm712_vm0, %v711_v0  ;;  %v441_v57 = vld [vmem:[%s851_s3] sm:$0x3] }
  0x2d   :  { %594 = vmatprep.subr.mxu1 %v711_v0  ;;  %608 = vmatprep.subr.mxu0 %v711_v0 }
  0x2e   :  { %609 = vmatpush3.msra.mxu0 %v438_v37 }
  0x2f   :  { %592 = vmatmul.mubr.msk.f32.vlgmr.msra.gmra.mxu1 %vm81_vm1, %v80_v2  ;;  %610 = vmatprep.subr.mxu0 %v711_v0 }
  0x30   :  { %595 = vmatpush3.msra.mxu1 %v66_v1  ;;  %596 = vmatprep.mubr.msk.f32.mxu1 %vm712_vm0, %v711_v0 }
  0x31   :  { %599 = vmatprep.subr.mxu1 %v711_v0  ;;  %611 = vmatpush3.msra.mxu0 %v437_v38 }
  0x32   :  { %612 = vmatprep.subr.mxu0 %v711_v0 }
  0x33   :  { %613 = vmatpush3.msra.mxu0 %v436_v39 }
  0x34   :  { %614 = vmatprep.subr.mxu0 %v711_v0 }
  0x35   :  { %615 = vmatpush3.msra.mxu0 %v435_v40 }
  0x36   :  { %616 = vmatprep.subr.mxu0 %v711_v0 }
  0x37   :  { %617 = vmatpush3.msra.mxu0 %v434_v41 }
  0x38   :  { %618 = vmatprep.subr.mxu0 %v711_v0 }
  0x39   :  { %619 = vmatpush3.msra.mxu0 %v433_v42 }
  0xb4   :  { %v79_v9 = vpop.xlane.xlu0 %78 }
  0xb5   :  { %v232_v10 = vrot.slane %v79_v9, 1 }
  0xeb   :  { %v154_v8 = vpop.f32.mrf.mxu1 }
  0xec   :  { %v235_v12 = vadd.f32 %v154_v8, %v79_v9 }
  0xed   :  { %v588_v11 = vpop.f32.mrf.mxu1 }
  0xee   :  { %v239_v17 = vadd.f32 %v238_v14, %v235_v12 }
  0xef   :  { %v227_v13 = vpop.f32.mrf.mxu1 }
  0xf0   :  { %v236_v15 = vadd.f32 %v232_v10, %v227_v13  ;;  %v241_v20 = vmax.f32 %v239_v17, 0.0 }
  0xf1   :  { %v593_v16 = vpop.f32.mrf.mxu1 }
  0xf2   :  { %v240_v18 = vadd.f32 %v238_v14, %v236_v15 }
  0xf4   :  { %v242_v19 = vmax.f32 %v240_v18, 0.0 }
  0xf6   :  { %v245_v21 = vrot.slane %v242_v19, 7 }
  0xf8   :  { %v247_v22 = vsel %vm246_vm3, %v245_v21, %v241_v20 }
  0xf9   :  { %v250_v23 = vsel %vm249_vm4, %v247_v22, -inf }
  0xfa   :  { %251 = vmax.xlane.f32.xlu0 %v250_v23 }
 0x183   :  { %v252_v24 = vpop.xlane.xlu0 %251 }
 0x184   :  { %v254_v25 = vrot.slane %v252_v24, 1  ;;  %v257_v26 = vsub.f32 %v241_v20, %v252_v24 }
 0x186   :  { %v258_v27 = vsub.f32 %v242_v19, %v254_v25  ;;  %v259_v28 = vmul.f32 1.442695, %v257_v26 }
 0x188   :  { %630 = vpow2.f32 %v259_v28  ;;  %v261_v29 = vmul.f32 1.442695, %v258_v27 }
 0x18a   :  { %632 = vpow2.f32 %v261_v29 }
 0x195   :  { %v631_v30 = vpop.eup %630 }
 0x196   :  { %597 = vmatmul.mubr.msk.f32.vlgmr.msra.gmra.mxu1 %vm272_vm5, %v631_v30 }
 0x197   :  { %v633_v31 = vpop.eup %632  ;;  %600 = vmatpush3.msra.mxu1 %v67_v5  ;;  %601 = vmatprep.mubr.msk.f32.mxu1 %vm712_vm0, %v711_v0 }
 0x198   :  { %v265_v32 = vrot.slane %v633_v31, 7 }
 0x19a   :  { %602 = vmatmul.mubr.msk.f32.vlgmr.msra.gmra.mxu1 %vm272_vm5, %v633_v31  ;;  %v266_v33 = vsel %vm246_vm3, %v265_v32, %v631_v30 }
 0x19b   :  { %v268_v34 = vsel %vm249_vm4, %v266_v33, 0.0 }
 0x19c   :  { %269 = vadd.xlane.f32.xlu1 %v268_v34 }
 0x1ad   :  { %429 = vrot.lane.b32.xlu1 %v65_v3, %s713_s28 }
 0x1b1   :  { %525 = vrot.lane.b32.xlu1 %v523_v43, %s713_s28 }
 0x225   :  { %v270_v44 = vpop.xlane.xlu1 %269 }
 0x226   :  { %634 = vrcp.f32 %v270_v44 }
 0x229   :  { %v430_v54 = vpop.permute.xlu1 %429 }
 0x22d   :  { %v526_v4 = vpop.permute.xlu1 %525 }
 0x233   :  { %v635_v45 = vpop.eup %634 }
 0x234   :  { %v418_v48 = vrot.slane %v635_v45, 1 }
 0x256   :  { %v341_v46 = vpop.f32.mrf.mxu1 }
 0x257   :  { %v421_v52 = vmul.f32 %v635_v45, %v341_v46 }
 0x258   :  { %v598_v47 = vpop.f32.mrf.mxu1 }
 0x25a   :  { %v413_v49 = vpop.f32.mrf.mxu1 }
 0x25b   :  { %v422_v50 = vmul.f32 %v418_v48, %v413_v49 }
 0x25c   :  { %v603_v51 = vpop.f32.mrf.mxu1 }
 0x25d   :  { %v425_v53 = vrot.slane %v422_v50, 7 }
 0x25f   :  { %v426_v55 = vsel %vm246_vm3, %v425_v53, %v421_v52 }
 0x260   :  { %v432_v56 = vsel %vm81_vm1, %v426_v55, %v430_v54 }
 0x261   :  { %621 = vmatmul.mubr.msk.f32.vlgmr.msra.gmra.mxu0 %vm442_vm6, %v432_v56 }
 0x321   :  { %v512_v58 = vpop.f32.mrf.mxu0 }
 0x322   :  { %v513_v59 = vadd.f32 %v512_v58, %v441_v57 }
 0x323   :  { %v622_v60 = vpop.f32.mrf.mxu0 }
 0x324   :  { %636 = vtanh.f32 %v513_v59  ;;  %v566_v62 = vmul.f32 -1.442695, %v513_v59 }
 0x326   :  { %638 = vpow2.f32 %v566_v62 }
 0x331   :  { %v637_v61 = vpop.eup %636 }
 0x332   :  { %530 = vrot.lane.b32.xlu0 %v637_v61, %s714_s4 }
 0x333   :  { %v639_v63 = vpop.eup %638 }
 0x334   :  { %v519_v0 = vadd.f32 1.0, %v639_v63 }
 0x336   :  { %640 = vrcp.f32 %v519_v0 }
 0x343   :  { %v641_v1 = vpop.eup %640 }
 0x344   :  { %v528_v5 = vmul.f32 %v641_v1, %v526_v4 }
 0x3a4   :  { %v531_v2 = vpop.permute.xlu0 %530 }
 0x3a5   :  { %v533_v3 = vmul.f32 %v641_v1, %v531_v2 }
 0x3a7   :  { %535 = vrot.lane.b32.xlu1 %v533_v3, %s713_s28 }
 0x419   :  { %v536_v6 = vpop.permute.xlu1 %535 }
 0x41a   :  { %v538_v7 = vadd.f32 %v536_v6, %v528_v5 }
 0x41c   :  { %642 = vtanh.f32 %v538_v7 }
 0x429   :  { %v643_v8 = vpop.eup %642 }
 0x42a   :  { %541 = vrot.lane.b32.xlu1 %v643_v8, %s714_s4 }
 0x49c   :  { %v542_v9 = vpop.permute.xlu1 %541 }
 0x49d   :  { %v544_v10 = vmul.f32 %v641_v1, %v542_v9 }
 0x49f   :  { %546 = vrot.lane.b32.xlu0 %v544_v10, %s713_s28 }
 0x511   :  { %v547_v11 = vpop.permute.xlu0 %546 }
 0x512   :  { %v549_v12 = vsel %vm81_vm1, %v547_v11, %v538_v7 }
 0x513   :  { %551 = vst.msk [vmem:[%s856_s8] sm:$0x3] %vm550_vm7, %v549_v12 }
 0x514   :  { %556 = vsyncpa [#allocation4], 1 }
 0x515   :  { %557 = vsyncpa [#allocation6], 1 }

</bundles_post_ra>
